<compile_context>
chip_gen: v7x
topology: tpu7x:2x2x1
jax: 0.10.0
libtpu: 0.0.40
codegen_flags: <defaults>
</compile_context>

<pallas_src>
import jax
import jax.numpy as jnp
from jax.experimental import pallas as pl
from jax.experimental.pallas import tpu as pltpu


# --------------------------------------------------------------------------
# Interpolation weights (PyTorch bilinear, align_corners=False)
# --------------------------------------------------------------------------
def _bilinear_weight_matrix(in_size: int, out_size: int) -> jnp.ndarray:
    """(out_size, in_size) interpolation matrix, PyTorch align_corners=False."""
    scale = in_size / out_size
    dst = jnp.arange(out_size, dtype=jnp.float32)
    src = (dst + 0.5) * scale - 0.5
    src = jnp.maximum(src, 0.0)                       # PyTorch clamps negative src to 0
    idx0 = jnp.minimum(jnp.floor(src).astype(jnp.int32), in_size - 1)
    idx1 = jnp.minimum(idx0 + 1, in_size - 1)
    lam1 = src - idx0.astype(jnp.float32)
    lam0 = 1.0 - lam1
    cols = jnp.arange(in_size, dtype=jnp.int32)[None, :]          # (1, in)
    w = (lam0[:, None] * (cols == idx0[:, None]).astype(jnp.float32)
         + lam1[:, None] * (cols == idx1[:, None]).astype(jnp.float32))
    return w


# --------------------------------------------------------------------------
# Kernel
# --------------------------------------------------------------------------
def _intp_kernel(x_ref, wh_ref, wwt_ref, o_ref, tmp_ref):
    # x_ref  : (1, C_BLK, H_in, W_in)   original input dtype
    # wh_ref : (H_out, H_in)            compute dtype, H interpolation weights
    # wwt_ref: (W_in, W_out)            compute dtype, W weights pre-transposed
    # o_ref  : (1, C_BLK*H_out, W_out)  output dtype
    # tmp_ref: (C_BLK*H_out, W_in)      compute dtype VMEM scratch (H-pass out)
    c_blk = x_ref.shape[1]
    h_out = wh_ref.shape[0]
    cdtype = wh_ref.dtype
    wh = wh_ref[...]
    wwt = wwt_ref[...]

    if c_blk == 1:
        # One channel per step: chain the two matmuls, skip the scratch.
        t = jnp.dot(wh, x_ref[0, 0].astype(cdtype),
                    preferred_element_type=jnp.float32)            # (H_out, W_in)
        y = jnp.dot(t.astype(cdtype), wwt,
                    preferred_element_type=jnp.float32)            # (H_out, W_out)
        o_ref[0] = y.astype(o_ref.dtype)
        return

    # H pass: per-channel matmul (no materialized broadcast of wh), stored into
    # the flat scratch so the W pass sees a single (C_BLK*H_out, W_in) operand.
    for c in range(c_blk):                  # static, small -> unrolled
        xc = x_ref[0, c].astype(cdtype)     # per-block cast in VMEM (VPU, hidden)
        t = jnp.dot(wh, xc, preferred_element_type=jnp.float32)    # (H_out, W_in)
        tmp_ref[pl.ds(c * h_out, h_out), :] = t.astype(cdtype)

    # W pass: one flat MXU matmul; M = C_BLK*H_out fills the MXU, and the rows
    # already match the flattened output block -> direct, reshape-free store.
    y = jnp.dot(tmp_ref[...], wwt, preferred_element_type=jnp.float32)
    o_ref[0] = y.astype(o_ref.dtype)


# --------------------------------------------------------------------------
# Wrapper helpers
# --------------------------------------------------------------------------
def _resolve_out_size(H, W, size, scale_factor):
    if size is not None:
        if isinstance(size, (tuple, list)):
            return int(size[0]), int(size[1])
        return int(size), int(size)
    if isinstance(scale_factor, (tuple, list)):
        sh, sw = scale_factor
    else:
        sh = sw = scale_factor
    # PyTorch: output_size = floor(input_size * scale_factor)
    return int(H * sh), int(W * sw)


def _vmem_capacity_bytes() -> int:
    try:
        return int(pltpu.get_tpu_info().vmem_capacity_bytes)
    except Exception:
        return 64 << 20        # conservative: v7x physical VMEM per TensorCore


def _select_compute_dtype(x_dtype, compute_dtype):
    if compute_dtype is not None:
        return jnp.dtype(compute_dtype)
    x_dtype = jnp.dtype(x_dtype)
    # v5e: bf16-native MXU; f32 matmuls are slow multi-pass emulation. The
    # bilinear weights have only 2 nonzeros per row summing to 1 and the
    # accumulation stays f32, so the accuracy cost is tiny.
    try:
        kind = jax.devices()[0].device_kind.lower()
    except Exception:
        kind = ""
    if x_dtype == jnp.dtype(jnp.float32) and (
            "v5 lite" in kind or "v5lite" in kind or "v5e" in kind):
        return jnp.dtype(jnp.bfloat16)
    return x_dtype


def _per_block_bytes(H_in, W_in, H_out, W_out, x_item, c_item, out_item):
    """Per-channel and fixed per-step VMEM footprint, with (8,128) padding."""
    pad = lambda n, m: ((n + m - 1) // m) * m
    wi, wo = pad(W_in, 128), pad(W_out, 128)
    hi, ho = pad(H_in, 8), pad(H_out, 8)
    per_c = (2 * hi * wi * x_item        # x block, double-buffered by the pipeline
             + 2 * ho * wo * out_item    # output block, double-buffered
             + ho * wi * c_item          # H-pass scratch (single copy)
             + 4 * ho * wo)              # f32 W-pass result before the output cast
    fixed = (ho * pad(H_in, 128) + pad(W_in, 8) * wo) * c_item   # weights, single-buffered
    return per_c, fixed


def _pick_c_block(C, H_out, cap):
    """Largest divisor of C within `cap` whose flattened output block
    (c_blk*H_out) stays sublane-aligned (or c_blk == C, always legal)."""
    aligned = [d for d in range(1, C + 1)
               if C % d == 0 and ((d * H_out) % 8 == 0 or d == C)]
    within = [d for d in aligned if d <= cap]
    if within:
        return max(within)
    # Rare: odd H_out with awkward C -> smallest legal block, budget overshoot
    # (vmem_limit is raised to the real need by the caller).
    return min(aligned)


def _weight_spec(shape):
    """Constant-index weight block: single-buffered (no re-fetch needed)."""
    idx = lambda c, b: (0, 0)
    try:
        return pl.BlockSpec(shape, idx, pipeline_mode=pl.Buffered(buffer_count=1))
    except Exception:
        # Older JAX without pipeline_mode: fall back to the default spec.
        return pl.BlockSpec(shape, idx)


# --------------------------------------------------------------------------
# Public entry point (forward pass of IntpConv; self.conv is nn.Identity)
# --------------------------------------------------------------------------
def intp_conv(x: jnp.ndarray, *, size=None, scale_factor=None,
              mode: str = 'bilinear', compute_dtype=None) -> jnp.ndarray:
    assert mode == 'bilinear', "only bilinear mode implemented"
    B, C, H, W = x.shape
    H_out, W_out = _resolve_out_size(H, W, size, scale_factor)

    out_dtype = x.dtype
    cdtype = _select_compute_dtype(x.dtype, compute_dtype)
    x_item = jnp.dtype(x.dtype).itemsize
    out_item = x_item
    c_item = cdtype.itemsize

    # Interpolation weights (built in f32, passed in the compute dtype).
    wh = _bilinear_weight_matrix(H, H_out).astype(cdtype)           # (H_out, H)
    wwt = _bilinear_weight_matrix(W, W_out).astype(cdtype).T        # (W, W_out) == Ww^T

    # ---- generation-aware tiling / VMEM accounting ----------------------
    vmem_cap = _vmem_capacity_bytes()
    budget = max(vmem_cap // 4, 4 << 20)        # ~16 MiB on v7x, ~32 MiB on v5e/v6e
    per_c, fixed = _per_block_bytes(H, W, H_out, W_out, x_item, c_item, out_item)
    cap_vmem = max(1, (budget - fixed) // per_c)
    min_steps = min(8, B * C)                   # keep the pipeline / both v7x TCs busy
    cap_steps = max(1, C // max(1, -(-min_steps // B)))
    cap = max(1, min(cap_vmem, cap_steps, 64, C))
    c_blk = _pick_c_block(C, H_out, cap)

    vmem_need = fixed + c_blk * per_c
    vmem_limit = max(2 * vmem_need, 32 << 20)
    vmem_limit = min(vmem_limit, (3 * vmem_cap) // 4)     # compiler headroom
    vmem_limit = int(min(max(vmem_limit, vmem_need + (8 << 20)), vmem_cap))

    grid = (C // c_blk, B)                      # larger parallel axis first (v7x)

    cost = pl.CostEstimate(
        flops=int(2 * B * C * H_out * W * (H + W_out)),
        transcendentals=0,
        bytes_accessed=int(B * C * (H * W * x_item + H_out * W_out * out_item)
                           + (H_out * H + W * W_out) * c_item),
    )

    out_flat = pl.pallas_call(
        _intp_kernel,
        out_shape=jax.ShapeDtypeStruct((B, C * H_out, W_out), out_dtype),
        grid_spec=pltpu.PrefetchScalarGridSpec(
            num_scalar_prefetch=0,
            grid=grid,
            in_specs=[
                pl.BlockSpec((1, c_blk, H, W), lambda c, b: (b, c, 0, 0)),
                _weight_spec((H_out, H)),
                _weight_spec((W, W_out)),
            ],
            out_specs=pl.BlockSpec((1, c_blk * H_out, W_out),
                                   lambda c, b: (b, c, 0)),
            scratch_shapes=[pltpu.VMEM((c_blk * H_out, W), cdtype)],
        ),
        compiler_params=pltpu.CompilerParams(
            dimension_semantics=("parallel", "parallel"),
            vmem_limit_bytes=vmem_limit,
        ),
        cost_estimate=cost,
    )(x, wh, wwt)

    # Contiguous reshape back to NCHW (metadata-only); conv is nn.Identity.
    return out_flat.reshape(B, C, H_out, W_out)


# --------------------------------------------------------------------------
if __name__ == "__main__":
    key = jax.random.PRNGKey(0)
    B, C, H, W = 2, 4, 16, 16
    scale_factor = 2
    x = jax.random.normal(key, (B, C, H, W), dtype=jnp.float32)

    y = intp_conv(x, scale_factor=scale_factor, mode='bilinear')
    y = jax.block_until_ready(y)

    # pure-JAX reference of the same interpolation
    wh = _bilinear_weight_matrix(H, H * scale_factor)
    ww = _bilinear_weight_matrix(W, W * scale_factor)
    ref = jnp.einsum('ph,bchw,qw->bcpq', wh, x, ww)

    cdtype = _select_compute_dtype(x.dtype, None)
    tol = 1e-4 if cdtype == jnp.dtype(jnp.float32) else 5e-2   # bf16 path on v5e

    assert y.shape == (B, C, H * scale_factor, W * scale_factor)
    assert y.dtype == x.dtype
    err = float(jnp.max(jnp.abs(y - ref)))
    assert err < tol, f"max abs err {err} > {tol}"

    print("KERNEL_OK")
</pallas_src>

<mosaic_0001>
module attributes {stable_mosaic.version = 11 : i64} {
  func.func @_intp_kernel(%arg0: i32, %arg1: i32, %arg2: memref<1x1x16x16xf32, #tpu.memory_space<vmem>>, %arg3: memref<32x16xf32, #tpu.memory_space<vmem>>, %arg4: memref<16x32xf32, #tpu.memory_space<vmem>>, %arg5: memref<1x32x32xf32, #tpu.memory_space<vmem>>, %arg6: memref<32x16xf32, #tpu.memory_space<vmem>>) attributes {dimension_semantics = [#tpu.dimension_semantics<parallel>, #tpu.dimension_semantics<parallel>], iteration_bounds = array<i64: 4, 2>, scalar_prefetch = 0 : i64, scratch_operands = 1 : i64, tpu.core_type = #tpu.core_type<tc>, window_params = [{transform_indices = @transform_0, window_bounds = array<i64: 1, 1, 16, 16>}, {pipeline_mode = #tpu.pipeline_mode<synchronous>, transform_indices = @transform_1, window_bounds = array<i64: 32, 16>}, {pipeline_mode = #tpu.pipeline_mode<synchronous>, transform_indices = @transform_2, window_bounds = array<i64: 16, 32>}, {transform_indices = @transform_3, window_bounds = array<i64: 1, 32, 32>}]} {
    %c0 = arith.constant 0 : index
    %c0_0 = arith.constant 0 : index
    %0 = vector.load %arg3[%c0, %c0_0] : memref<32x16xf32, #tpu.memory_space<vmem>>, vector<32x16xf32>
    %c0_1 = arith.constant 0 : index
    %c0_2 = arith.constant 0 : index
    %1 = vector.load %arg4[%c0_1, %c0_2] : memref<16x32xf32, #tpu.memory_space<vmem>>, vector<16x32xf32>
    %c0_3 = arith.constant 0 : index
    %c0_4 = arith.constant 0 : index
    %c0_5 = arith.constant 0 : index
    %c0_6 = arith.constant 0 : index
    %2 = vector.load %arg2[%c0_3, %c0_4, %c0_5, %c0_6] : memref<1x1x16x16xf32, #tpu.memory_space<vmem>>, vector<1x1x16x16xf32>
    %3 = vector.shape_cast %2 : vector<1x1x16x16xf32> to vector<16x16xf32>
    %cst = arith.constant dense<0.000000e+00> : vector<32x16xf32>
    %4 = tpu.matmul %0, %3, %cst {dimension_numbers = #tpu.dot_dimension_numbers<[1], [0], [0], [1], [0, 0, 1, 1], [], []>} : vector<32x16xf32>, vector<16x16xf32>, vector<32x16xf32> -> vector<32x16xf32>
    %cst_7 = arith.constant dense<0.000000e+00> : vector<32x32xf32>
    %5 = tpu.matmul %4, %1, %cst_7 {dimension_numbers = #tpu.dot_dimension_numbers<[1], [0], [0], [1], [0, 0, 1, 1], [], []>} : vector<32x16xf32>, vector<16x32xf32>, vector<32x32xf32> -> vector<32x32xf32>
    %c0_8 = arith.constant 0 : index
    %c0_9 = arith.constant 0 : index
    %c0_10 = arith.constant 0 : index
    %6 = vector.load %arg5[%c0_8, %c0_9, %c0_10] : memref<1x32x32xf32, #tpu.memory_space<vmem>>, vector<1x32x32xf32>
    %7 = vector.shape_cast %6 : vector<1x32x32xf32> to vector<32x32xf32>
    %8 = vector.shape_cast %5 : vector<32x32xf32> to vector<1x32x32xf32>
    tpu.vector_store %arg5[%c0_8, %c0_9, %c0_10], %8 {strides = array<i32>} : memref<1x32x32xf32, #tpu.memory_space<vmem>>, vector<1x32x32xf32>,
    return
  }
  func.func @transform_0(%arg0: i32, %arg1: i32) -> (i32, i32, i32, i32) {
    %c0_i32 = arith.constant 0 : i32
    %c0_i32_0 = arith.constant 0 : i32
    %c0_i32_1 = arith.constant 0 : i32
    return %arg1, %arg0, %c0_i32, %c0_i32_0 : i32, i32, i32, i32
  }
  func.func @transform_1(%arg0: i32, %arg1: i32) -> (i32, i32) {
    %c0_i32 = arith.constant 0 : i32
    %c0_i32_0 = arith.constant 0 : i32
    %c0_i32_1 = arith.constant 0 : i32
    return %c0_i32, %c0_i32_0 : i32, i32
  }
  func.func @transform_2(%arg0: i32, %arg1: i32) -> (i32, i32) {
    %c0_i32 = arith.constant 0 : i32
    %c0_i32_0 = arith.constant 0 : i32
    %c0_i32_1 = arith.constant 0 : i32
    return %c0_i32, %c0_i32_0 : i32, i32
  }
  func.func @transform_3(%arg0: i32, %arg1: i32) -> (i32, i32, i32) {
    %c0_i32 = arith.constant 0 : i32
    %c0_i32_0 = arith.constant 0 : i32
    return %arg1, %arg0, %c0_i32 : i32, i32, i32
  }
}

</mosaic_0001>

<bundles_post_ra>
// kernel: tpu_custom_call.1
= control target key start
LH: loop header
LB: loop body
LE: loop exit
PB: predicated region body
PF: predicated region fallthrough
CT: control target
= control target key end

     0   :  { %8 = vsyncpa [#allocation4], 0  ;;  %s959_s0 = inlined_call_operand.hbm [shape: f32[2,4,16,16], index: 0, kind: input, shape index: {}]   ;;  %s960_s1 = inlined_call_operand.vmem [shape: f32[32,16], index: 1, kind: input, shape index: {}]   ;;  %s961_s2 = inlined_call_operand.vmem [shape: f32[16,32], index: 2, kind: input, shape index: {}]   ;;  %s962_s3 = inlined_call_operand.vmem [shape: f32[2,128,32], index: 3, kind: output, shape index: {}]  }
   0x1   :  { %10 = vsyncpa [#allocation4 + $0x1], 0  ;;  %s781_s12 = smov 0   ;;  %s783_s13 = smov 0  }
   0x2   :  { %s785_s14 = smov 0   ;;  %s787_s15 = smov 0  }
   0x3   :  { %s789_s16 = smov 0   ;;  %s791_s17 = smov 0  }
   0x4   :  { %s793_s18 = smov 0   ;;  %s795_s19 = smov 0  }
   0x5 LB: > { %s524_s20 = sadd.s32 4294967295, %s756_s19   ;;  %s25_s21 = sadd.s32 1, %s748_s17  ;;  %s756_s19 = sphi %s795_s19, %s16_s19   ;;  %s752_s18 = sphi %s793_s18, %s973_s18   ;;  %s748_s17 = sphi %s791_s17, %s972_s17   ;;  %s744_s16 = sphi %s789_s16, %s971_s16   ;;  %s740_s15 = sphi %s787_s15, %s970_s15   ;;  %s736_s14 = sphi %s785_s14, %s969_s14   ;;  %s732_s13 = sphi %s783_s13, %s968_s13   ;;  %s728_s12 = sphi %s781_s12, %s967_s12  }
   0x6   : > { %p26_p0 = scmp.ge.s32.totalorder %s25_s21, 2  ;;  %s28_s22 = sadd.s32 1, %s752_s18 }
   0x7   : > { %s37_s23 = sadd.s32 1, %s736_s14  ;;  %p44_p1 = scmp.ne.s32.totalorder %s736_s14, %s732_s13 }
   0x8   : > { %s975_s21 = smov (%p26_p0, %s25_s21), 0  ;;  %s977_s22 = smov (!%p26_p0, %s28_s22), %s752_s18 }
   0x9   : > { %s32_s24 = ssub.s32 %s748_s17, %s975_s21  ;;  %p45_p2 = scmp.eq.s32.totalorder %s756_s19, 0 }
   0xa   : > { %p30_p3 = scmp.ge.s32.totalorder %s977_s22, 4  ;;  %p50_p4 = scmp.ne.s32.totalorder %s732_s13, %s728_s12 }
   0xb   : > { %p832_p5 = por %p45_p2, %p44_p1  ;;  %p51_p6 = scmp.eq.s32.totalorder %s524_s20, 0 }
   0xc   : > { %s979_s22 = smov (%p30_p3, %s977_s22), 0  ;;  %p593_p8 = scmp.lt.s32.totalorder %s756_s19, 8 }
   0xd   : > { %p838_p7 = por %p51_p6, %p50_p4  ;;  %s33_s27 = ssub.s32 %s752_s18, %s979_s22 }
   0xe   : > { %s34_s28 = sor.u32 %s33_s27, %s32_s24  ;;  %s150_s29 = sand.u32 1, %s736_s14  }
   0xf   : > { %p35_p9 = scmp.eq.s32.totalorder %s34_s28, 0  ;;  %s528_s30 = sshll.u32 %s150_s29, 4 }
  0x10   : > { %s529_s4 = sshll.u32 %s752_s18, 1  ;;  %s530_s6 = sshll.u32 %s748_s17, 3 }
  0x11   : > { %s848_s5 = scalar_select %p35_p9, %s736_s14, %s37_s23  }
  0x12   : > { %s160_s7 = sadd.s32 %s530_s6, %s529_s4  ;;  %s154_s8 = scalar_lea.vmem [#allocation3], %s528_s30 }
  0x13   : > { %s163_s9 = sshll.u32 %s154_s8, 4  ;;  %s531_s10 = sshll.u32 %s160_s7, 7  ;;  %s851_s9 = int_to_ptr.vmem [resolvable:$true] %s163_s9 }
  0x14   : > { %s856_s20 = scalar_lea.hbm %s959_s0, %s531_s10  ;;  %p862_p10 = pnand %p593_p8, %p832_p5 }
  0x15   : > { %s867_s24 = scalar_lea.sflag [#allocation4], %s150_s29  ;;  %s660_s27 = scalar_lea.hbm %s856_s20, 256 }
  0x16   : > { %p661_p12 = scmp.ne.s32.totalorder %s856_s20, %s660_s27  ;;  %p662_p13 = pneg %p862_p10 }
  0x17   : > { %s665_s30 = scalar_lea.hbm %s959_s0, 2048  ;;  %p666_p2 = scmp.lt.u32.totalorder %s856_s20, %s959_s0 }
  0x18   : > { %p663_p0 = pnand %p662_p13, %p661_p12  ;;  %p667_p3 = scmp.lt.u32.totalorder %s665_s30, %s660_s27 }
  0x19   : > { %p669_p5 = scmp.lt.u32.totalorder %s660_s27, %s856_s20 }
  0x1a   : > { %p664_p1 = pneg %p663_p0  ;;  %p668_p4 = por %p667_p3, %p666_p2 }
  0x1c   : > { %p670_p6 = por %p669_p5, %p668_p4 }
  0x1e   : > { %p671_p8 = pnand %p670_p6, %p664_p1 }
  0x20   : > { %674 = shalt.err (!%p671_p8)
}
  0x21   : > { %s675_s29 = scalar_lea.vmem %s851_s9, 256  ;;  %s758_s7 = smov [#allocation3]  }
  0x22   : > { %p676_p9 = scmp.ne.s32.totalorder %s851_s9, %s675_s29  ;;  %s680_s8 = sshll.u32 %s758_s7, 4  ;;  %s681_s8 = int_to_ptr.vmem [resolvable:$false] %s680_s8 }
  0x23   : > { %s682_s10 = scalar_lea.vmem %s681_s8, 512  ;;  %p683_p11 = scmp.lt.s32.totalorder %s851_s9, %s681_s8 }
  0x24   : > { %p678_p12 = pnand %p676_p9, %p662_p13  ;;  %p684_p2 = scmp.lt.s32.totalorder %s682_s10, %s675_s29 }
  0x26   : > { %p679_p0 = pneg %p678_p12  ;;  %p685_p3 = por %p684_p2, %p683_p11 }
  0x28   : > { %p686_p4 = pnand %p685_p3, %p679_p0 }
  0x2a   : > { %689 = shalt.err (!%p686_p4)
}
  0x2b   : > { %s759_s11 = smov 128   ;;  %s760_s12 = smov 8  }
  0x2c   : > { %592 = dma.hbm_to_vmem [thread:$0]  (!%p862_p10), %s856_s20, 256, %s851_s9, %s867_s24, %s759_s11, %s759_s11, %s760_s12  }
  0x2d   : > { %p171_p13 = scmp.lt.s32.totalorder %s756_s19, 9  ;;  %p966_p1 = scmp.ge.s32.totalorder %s756_s19, 1 }
  0x2f   : > { %p172_p5 = pnand %p966_p1, %p171_p13 }
  0x30   : > { %s177_s27 = sand.u32 (!%p172_p5), 1, %s732_s13  }
  0x31   : > { %175 = sbr.rel (%p172_p5) target bundleno = 496 (0x1f0), region = 32  ;;  %s533_s25 = sshll.u32 (!%p172_p5), %s177_s27, 4 }
  0x32   : > { %s178_s28 = scalar_lea.sflag (!%p172_p5), [#allocation4], %s177_s27  ;;  %s181_s30 = scalar_lea.vmem (!%p172_p5), [#allocation3], %s533_s25 }
  0x38   : > { %723 = dma.done.wait (%p838_p7), %s178_s28, 256  }
  0x39   : > { %725 = vsyncadd (%p838_p7), %s178_s28, 4294967040  ;;  %vm226_vm0 = vcmask 130048   ;;  %v224_v0 = vld [vmem:[%s181_s30] sm:$0xff]  ;;  %v225_v1 = vld [vmem:[%s181_s30 + $0x8] sm:$0xff]  ;;  %s534_s12 = sshll.u32 %s744_s16, 2  ;;  %p209_p7 = scmp.lt.s32.totalorder %s740_s15, 1 }
  0x3a   : > { %v218_v2 = vld [vmem:[%s960_s1] sm:$0xff]  ;;  %v579_v3 = vpack.c.bf16 %v225_v1, %v224_v0  ;;  %v223_v5 = vld [vmem:[%s961_s2 + $0x8] sm:$0xff]  ;;  %v220_v8 = vld [vmem:[%s960_s1 + $0x10] sm:$0xff]  ;;  %p211_p10 = scmp.lt.s32.totalorder %s534_s12, 15  ;;  %vm421_vm1 = vcmask 261120  }
  0x3b   : > { %563 = vmatprep.mubr.msk.f32.mxu0 %vm226_vm0, %v218_v2  ;;  %v222_v4 = vld [vmem:[%s961_s2] sm:$0xff]  ;;  %v219_v7 = vld [vmem:[%s960_s1 + $0x8] sm:$0xff]  ;;  %v221_v9 = vld [vmem:[%s960_s1 + $0x18] sm:$0xff]  ;;  %s981_s15 = smov (!%p209_p7, %s740_s15), 1 }
  0x3c   : > { %580 = vmatprep.subr.bf16.mxu0 %v579_v3  ;;  %v583_v6 = vpack.c.bf16 %v223_v5, %v222_v4  ;;  %s983_s12 = smov (!%p211_p10, %s534_s12), 15  ;;  %s535_s27 = sshll.u32 %s981_s15, 4 }
  0x3d   : > { %582 = vmatpush3.bf16.msra.mxu0 %v579_v3  ;;  %s214_s25 = sadd.s32 %s535_s27, %s983_s12 }
  0x3e   : > { %584 = vmatprep.subr.bf16.mxu1 %v583_v6  ;;  %s536_s28 = sshll.u32 %s214_s25, 3 }
  0x3f   : > { %586 = vmatpush3.bf16.msra.mxu1 %v583_v6  ;;  %s216_s9 = scalar_lea.vmem %s962_s3, %s536_s28 }
  0x40   : > { %564 = vmatmul.mubr.msk.f32.vlgmr.msra.gmra.mrb[0].mxu0 %vm226_vm0, %v219_v7 }
  0x41   : > { %566 = vmatprep.mubr.msk.f32.mxu0 %vm226_vm0, %v220_v8 }
  0x44   : > { %567 = vmatmul.mubr.msk.f32.gmra.mrb[2].mxu0 %vm226_vm0, %v221_v9 }
 0x113   : > { %v565_v10 = vpop.f32.mrb[0].mxu0 }
 0x114   : > { %v305_v11 = vpop.f32.mrb[1].mxu0 }
 0x115   : > { %573 = vmatprep.mubr.msk.f32.mxu1 %vm226_vm0, %v305_v11 }
 0x116   : > { %574 = vmatmul.mubr.msk.f32.vlgmr.msra.gmra.mrb[0].mxu1 %vm226_vm0, %v565_v10 }
 0x117   : > { %v568_v12 = vpop.f32.mrb[2].mxu0 }
 0x118   : > { %v315_v13 = vpop.f32.mrb[3].mxu0 }
 0x119   : > { %576 = vmatprep.mubr.msk.f32.mxu1 %vm226_vm0, %v315_v13 }
 0x11a   : > { %577 = vmatmul.mubr.msk.f32.gmra.mrb[2].mxu1 %vm226_vm0, %v568_v12 }
 0x1e9   : > { %v575_v14 = vpop.f32.mrb[0].mxu1 }
 0x1ea   : > { %423 = vst.msk [vmem:[%s216_s9 + $0x8] sm:$0xff] %vm421_vm1, %v575_v14  ;;  %v402_v15 = vpop.f32.mrb[1].mxu1 }
 0x1eb   : > { %422 = vst.msk [vmem:[%s216_s9] sm:$0xff] %vm421_vm1, %v402_v15 }
 0x1ed   : > { %v578_v16 = vpop.f32.mrb[2].mxu1 }
 0x1ee   : > { %425 = vst.msk [vmem:[%s216_s9 + $0x18] sm:$0xff] %vm421_vm1, %v578_v16  ;;  %v412_v17 = vpop.f32.mrb[3].mxu1 }
 0x1ef   : > { %424 = vst.msk [vmem:[%s216_s9 + $0x10] sm:$0xff] %vm421_vm1, %v412_v17 }
 0x1f0 PF: > { %s16_s19 = sadd.s32 1, %s756_s19   ;;  %s967_s12 = smov %s732_s13 }
 0x1f1   : > { %p13_p11 = scmp.ge.s32.totalorder %s16_s19, 10   ;;  %s968_s13 = smov %s736_s14 }
 0x1f2   : > { %s969_s14 = smov %s848_s5  ;;  %s970_s15 = smov %s748_s17 }
 0x1f3   : > { %s971_s16 = smov %s752_s18  ;;  %s972_s17 = smov %s975_s21 }
 0x1f4   : > { %s973_s18 = smov %s979_s22  ;;  %15 = sbr.rel (!%p13_p11) target bundleno = 5 (0x5), region = 72 }
 0x1fb   :  { %456 = vsyncpa [#allocation4], 1 }
 0x1fc   :  { %458 = vsyncpa [#allocation4 + $0x1], 1 }

</bundles_post_ra>
